<compile_context>
chip_gen: v6e
topology: v6e:2x2x1
jax: 0.10.0
libtpu: 0.0.40
codegen_flags: <defaults>
</compile_context>

<pallas_src>
import jax
import jax.numpy as jnp
from jax.experimental import pallas as pl
from jax.experimental.pallas import tpu as pltpu


def _round_up(x, m):
    return ((x + m - 1) // m) * m


def _const_spec(shape, single_buffer):
    """Full-array resident block with a constant index map (weights / encoder_out)."""
    n = len(shape)
    idx = lambda *_, n=n: (0,) * n
    if single_buffer:
        # Review: constant-index blocks do not need double buffering; halve their VMEM.
        return pl.BlockSpec(shape, idx, pipeline_mode=pl.Buffered(1))
    return pl.BlockSpec(shape, idx)


# ----------------------------------------------------------------------------
# Encoder kernel: per-image conv-as-matmul (im2col done in wrapper) + ReLU.
# Grid = (B,), one image per step.  Adaptive average pooling is a reshape+mean
# done in the wrapper (VPU-style glue; the former dense pooling matmul is gone).
# ----------------------------------------------------------------------------
def encoder_kernel(x_ref, w_ref, b_ref, feat_ref):
    feat = jnp.dot(x_ref[0], w_ref[...], preferred_element_type=jnp.float32)
    feat_ref[0] = jnp.maximum(feat + b_ref[...], 0.0)            # ReLU features


def encoder_forward(params, images, embed_size, single_buffer=True):
    """EncoderCNN.forward: conv features -> AdaptiveAvgPool2d((E,E)) -> permute to NHWC."""
    B, Cin, H, W = images.shape
    De = params['conv_w'].shape[-1]
    E = embed_size
    win = H // E                         # assumes H == W and H % E == 0 (as before)

    # im2col in the wrapper (toy scale).
    # TODO(synk): at ResNet-scale H,W the 9x im2col blowup should be replaced by
    #             in-kernel shifted-tap loads / per-tap matmul accumulation.
    x = jnp.transpose(images, (0, 2, 3, 1))                      # NCHW -> NHWC
    xp = jnp.pad(x, ((0, 0), (1, 1), (1, 1), (0, 0)))
    patches = jnp.concatenate(
        [xp[:, dy:dy + H, dx:dx + W, :] for dy in range(3) for dx in range(3)],
        axis=-1)                                                 # (B, H, W, 9*Cin)
    K = 9 * Cin
    Kp = _round_up(K, 128)               # pad contraction dim for MXU alignment
    X = patches.reshape(B, H * W, K).astype(jnp.float32)
    X = jnp.pad(X, ((0, 0), (0, 0), (0, Kp - K)))
    Wc = jnp.pad(params['conv_w'].reshape(K, De), ((0, Kp - K), (0, 0)))
    bc = params['conv_b'].reshape(1, De)

    feat = pl.pallas_call(
        encoder_kernel,
        grid=(B,),
        in_specs=[pl.BlockSpec((1, H * W, Kp), lambda b: (b, 0, 0)),
                  _const_spec((Kp, De), single_buffer),
                  _const_spec((1, De), single_buffer)],
        out_specs=pl.BlockSpec((1, H * W, De), lambda b: (b, 0, 0)),
        out_shape=jax.ShapeDtypeStruct((B, H * W, De), jnp.float32),
        compiler_params=pltpu.CompilerParams(
            dimension_semantics=("parallel",),
            vmem_limit_bytes=64 * 1024 * 1024),
    )(X, Wc, bc)

    # AdaptiveAvgPool2d((E,E)) as reshape+mean (replaces the dense pooling matmul),
    # followed by the NHWC layout that equals PyTorch's out.permute(0, 2, 3, 1).
    feat = feat.reshape(B, E, win, E, win, De)
    return jnp.mean(feat, axis=(2, 4))                           # (B, E, E, De)


# ----------------------------------------------------------------------------
# Decoder chunk kernel.  Grid = (T_pad // TC,), TC timesteps per grid step.
# h/c live in VMEM scratch across grid steps.  The variable batch_size_t of the
# PyTorch loop is reproduced exactly with a per-row mask (rows with
# decode_len <= t are frozen and their output rows stay zero, matching
# torch.zeros initialization + partial writes).  Batch/vocab are padded to
# 8 / 128 in the wrapper; padded rows have mask == 0 and are trimmed afterwards.
# ----------------------------------------------------------------------------
def decoder_chunk_kernel(
        enc_ref, emb_ref, mask_ref,
        w_ea_ref, b_ea_ref, w_da_ref, b_da_ref, v_at_ref, b_at_ref,
        w_fb_ref, b_fb_ref, w_lstm_ref, b_lstm_ref,
        w_init_ref, b_init_ref, w_fc_ref, b_fc_ref,
        pred_ref, alpha_ref,
        h_ref, c_ref):
    g = pl.program_id(0)
    enc = enc_ref[...]                               # (B, P, De)  (B = padded batch)
    B, P, De = enc.shape
    Hd = h_ref.shape[-1]
    TC = emb_ref.shape[0]

    enc2d = enc.reshape(B * P, De)                   # flat view for 2D MXU matmuls

    # init_hidden_state: [h0 | c0] = mean(enc) @ [W_init_h | W_init_c]  (single fused matmul)
    @pl.when(g == 0)
    def _init():
        mean_enc = jnp.sum(enc, axis=1) * (1.0 / P)                        # (B, De)
        hc0 = (jnp.dot(mean_enc, w_init_ref[...],
                       preferred_element_type=jnp.float32) + b_init_ref[...])
        h_ref[...] = hc0[:, :Hd]
        c_ref[...] = hc0[:, Hd:]

    # encoder_attn(encoder_out) is h-independent: compute once per chunk, 2D shaped.
    attn1 = (jnp.dot(enc2d, w_ea_ref[...], preferred_element_type=jnp.float32)
             + b_ea_ref[...]).reshape(B, P, -1)                            # (B, P, A)

    h = h_ref[...]                                   # (B, Hd)
    c = c_ref[...]                                   # (B, Hd)

    for tc in range(TC):                             # static, fully unrolled chunk
        msk = mask_ref[tc]                           # (B, 1)  active-row mask at time t

        # ---- Attention ------------------------------------------------------
        attn2 = (jnp.dot(h, w_da_ref[...], preferred_element_type=jnp.float32)
                 + b_da_ref[...])                                          # (B, A)
        pre = jnp.maximum(attn1 + attn2[:, None, :], 0.0)                  # ReLU, (B, P, A)
        scores = jnp.sum(pre * v_at_ref[...], axis=-1) + b_at_ref[...]     # (B, P)
        m = jnp.max(scores, axis=1, keepdims=True)
        e = jnp.exp(scores - m)
        alpha = e / jnp.sum(e, axis=1, keepdims=True)                      # softmax over pixels
        # context via VPU multiply + reduce (no M=1 matmul)
        awe = jnp.sum(alpha[:, :, None] * enc, axis=1)                     # (B, De)

        # gate = sigmoid(f_beta(h)); awe = gate * awe
        gate = jax.nn.sigmoid(jnp.dot(h, w_fb_ref[...],
                                      preferred_element_type=jnp.float32) + b_fb_ref[...])
        awe = gate * awe

        # ---- LSTMCell (PyTorch gate order i, f, g, o), fused gate matmul ----
        x = emb_ref[tc] + awe                                              # (B, De)
        xh = jnp.concatenate([x, h], axis=-1)                              # (B, De+Hd)
        gates = (jnp.dot(xh, w_lstm_ref[...], preferred_element_type=jnp.float32)
                 + b_lstm_ref[...])                                        # (B, 4*Hd)
        i_g = jax.nn.sigmoid(gates[:, 0 * Hd:1 * Hd])
        f_g = jax.nn.sigmoid(gates[:, 1 * Hd:2 * Hd])
        g_g = jnp.tanh(gates[:, 2 * Hd:3 * Hd])
        o_g = jax.nn.sigmoid(gates[:, 3 * Hd:4 * Hd])
        c_new = f_g * c + i_g * g_g
        h_new = o_g * jnp.tanh(c_new)

        # fc (dropout == identity in eval mode); vocab padded to 128-multiple (zero cols)
        preds = (jnp.dot(h_new, w_fc_ref[...], preferred_element_type=jnp.float32)
                 + b_fc_ref[...])                                          # (B, Vp)

        pred_ref[tc] = msk * preds
        alpha_ref[tc] = msk * alpha
        h = msk * h_new + (1.0 - msk) * h
        c = msk * c_new + (1.0 - msk) * c

    h_ref[...] = h
    c_ref[...] = c


def decoder_forward(params, encoder_out, encoded_captions, caption_len,
                    single_buffer=True, tc_steps=4):
    """AttnDecoderRNN.forward"""
    B, P, De = encoder_out.shape
    A = params['W_ea'].shape[-1]
    Hd = params['W_hh'].shape[0]
    V = params['W_fc'].shape[-1]

    decode_len = [int(c) - 1 for c in caption_len]
    T = max(decode_len)

    # ---- alignment padding (review: B -> 8 sublanes, V -> 128 lanes, T -> TC chunks) ----
    Bp = _round_up(B, 8)
    Vp = _round_up(V, 128)
    TC = tc_steps
    Tp = _round_up(T, TC)

    emb = params['embedding'][encoded_captions]                         # (B, L, De) gather (glue)
    emb_t = jnp.transpose(emb[:, :T, :], (1, 0, 2)).astype(jnp.float32)  # (T, B, De)
    emb_t = jnp.pad(emb_t, ((0, Tp - T), (0, Bp - B), (0, 0)))

    dl = jnp.array(decode_len, dtype=jnp.int32)
    mask = (jnp.arange(T)[:, None] < dl[None, :]).astype(jnp.float32)[:, :, None]  # (T, B, 1)
    mask = jnp.pad(mask, ((0, Tp - T), (0, Bp - B), (0, 0)))            # padded rows/steps -> 0

    enc = jnp.pad(encoder_out.astype(jnp.float32), ((0, Bp - B), (0, 0), (0, 0)))

    # fused / padded weights
    W_lstm = jnp.concatenate([params['W_ih'], params['W_hh']], axis=0)          # (De+Hd, 4Hd)
    b_lstm = (params['b_ih'] + params['b_hh']).reshape(1, 4 * Hd)
    W_init = jnp.concatenate([params['W_init_h'], params['W_init_c']], axis=1)  # (De, 2Hd)
    b_init = jnp.concatenate([params['b_init_h'], params['b_init_c']]).reshape(1, 2 * Hd)
    W_fc = jnp.pad(params['W_fc'], ((0, 0), (0, Vp - V)))
    b_fc = jnp.pad(params['b_fc'], (0, Vp - V)).reshape(1, Vp)

    weights = [
        params['W_ea'], params['b_ea'].reshape(1, A),
        params['W_da'], params['b_da'].reshape(1, A),
        params['v_attn'].reshape(1, 1, A), params['b_attn'].reshape(1, 1),
        params['W_fb'], params['b_fb'].reshape(1, De),
        W_lstm, b_lstm, W_init, b_init, W_fc, b_fc,
    ]

    in_specs = [
        _const_spec((Bp, P, De), single_buffer),            # encoder_out (resident)
        pl.BlockSpec((TC, Bp, De), lambda g: (g, 0, 0)),    # embeddings, TC steps per block
        pl.BlockSpec((TC, Bp, 1), lambda g: (g, 0, 0)),     # active-row masks
    ] + [_const_spec(w.shape, single_buffer) for w in weights]

    out_specs = [
        pl.BlockSpec((TC, Bp, Vp), lambda g: (g, 0, 0)),    # predictions (time-major, padded)
        pl.BlockSpec((TC, Bp, P), lambda g: (g, 0, 0)),     # alphas (time-major, padded)
    ]

    preds_t, alphas_t = pl.pallas_call(
        decoder_chunk_kernel,
        grid=(Tp // TC,),
        in_specs=in_specs,
        out_specs=out_specs,
        out_shape=(jax.ShapeDtypeStruct((Tp, Bp, Vp), jnp.float32),
                   jax.ShapeDtypeStruct((Tp, Bp, P), jnp.float32)),
        scratch_shapes=[pltpu.VMEM((Bp, Hd), jnp.float32),   # h
                        pltpu.VMEM((Bp, Hd), jnp.float32)],  # c
        compiler_params=pltpu.CompilerParams(
            dimension_semantics=("arbitrary",),              # time is sequential
            vmem_limit_bytes=64 * 1024 * 1024),
    )(enc, emb_t, mask, *weights)

    predictions = jnp.transpose(preds_t[:T, :B, :V], (1, 0, 2))   # (B, T, V)
    alphas = jnp.transpose(alphas_t[:T, :B, :], (1, 0, 2))        # (B, T, P)
    return predictions, encoded_captions, decode_len, alphas


def cnn_to_rnn_forward(params, images, encoded_captions, caption_len, embed_size,
                       single_buffer_weights=True):
    enc_nhwc = encoder_forward(params, images, embed_size, single_buffer_weights)   # (B,E,E,De)
    B = enc_nhwc.shape[0]
    encoder_out = enc_nhwc.reshape(B, -1, enc_nhwc.shape[-1])                        # (B,P,De)
    return decoder_forward(params, encoder_out, encoded_captions, caption_len,
                           single_buffer=single_buffer_weights)


# ----------------------------------------------------------------------------
# Deterministic synthetic parameter init (shapes from the module's __init__).
# ----------------------------------------------------------------------------
def init_params(key, attn_dim, decoder_dim, vocab_size, encoder_dim, cin=3):
    ks = jax.random.split(key, 24)
    u = lambda k, shape: jax.random.uniform(k, shape, jnp.float32, -0.1, 0.1)
    return dict(
        conv_w=u(ks[0], (3, 3, cin, encoder_dim)),
        conv_b=jnp.zeros((encoder_dim,), jnp.float32),
        embedding=u(ks[1], (vocab_size, encoder_dim)),        # nn.Embedding(vocab, encoder_dim)
        W_ea=u(ks[2], (encoder_dim, attn_dim)), b_ea=u(ks[3], (attn_dim,)),
        W_da=u(ks[4], (decoder_dim, attn_dim)), b_da=u(ks[5], (attn_dim,)),
        v_attn=u(ks[6], (attn_dim,)), b_attn=u(ks[7], (1,)),
        W_fb=u(ks[8], (decoder_dim, encoder_dim)), b_fb=u(ks[9], (encoder_dim,)),
        W_ih=u(ks[10], (encoder_dim, 4 * decoder_dim)),
        W_hh=u(ks[11], (decoder_dim, 4 * decoder_dim)),
        b_ih=u(ks[12], (4 * decoder_dim,)), b_hh=u(ks[13], (4 * decoder_dim,)),
        W_init_h=u(ks[14], (encoder_dim, decoder_dim)), b_init_h=u(ks[15], (decoder_dim,)),
        W_init_c=u(ks[16], (encoder_dim, decoder_dim)), b_init_c=u(ks[17], (decoder_dim,)),
        W_fc=u(ks[18], (decoder_dim, vocab_size)),            # fc: uniform(-0.1,0.1)
        b_fc=jnp.zeros((vocab_size,), jnp.float32),           # fc bias: 0
    )


if __name__ == "__main__":
    key = jax.random.PRNGKey(0)
    B, Cin, Himg, Wimg = 2, 3, 16, 16
    attn_dim, embed_dim, decoder_dim, vocab_size, encoder_dim = 16, 32, 32, 64, 32
    embed_size = 4                       # adaptive pool -> (4,4) => num_pixels = 16

    pkey, ikey, ckey = jax.random.split(key, 3)
    params = init_params(pkey, attn_dim, decoder_dim, vocab_size, encoder_dim, cin=Cin)

    images = jax.random.normal(ikey, (B, Cin, Himg, Wimg), jnp.float32)   # NCHW like PyTorch
    encoded_captions = jax.random.randint(ckey, (B, 8), 0, vocab_size)
    caption_len = [8, 6]                 # sorted descending (standard for this model)

    def _run(single_buffer):
        out = cnn_to_rnn_forward(params, images, encoded_captions, caption_len,
                                 embed_size, single_buffer_weights=single_buffer)
        jax.block_until_ready((out[0], out[3]))
        return out

    try:
        predictions, caps, decode_len, alphas = _run(True)
    except Exception:
        # Fallback for Pallas builds without BlockSpec pipeline_mode / Buffered(1) support.
        predictions, caps, decode_len, alphas = _run(False)

    assert predictions.shape == (B, max(decode_len), vocab_size)
    assert alphas.shape == (B, max(decode_len), embed_size * embed_size)
    print("KERNEL_OK")
</pallas_src>

<mosaic_0001>
module attributes {stable_mosaic.version = 11 : i64} {
  func.func @encoder_kernel(%arg0: i32, %arg1: memref<1x256x128xf32, #tpu.memory_space<vmem>>, %arg2: memref<128x32xf32, #tpu.memory_space<vmem>>, %arg3: memref<1x32xf32, #tpu.memory_space<vmem>>, %arg4: memref<1x256x32xf32, #tpu.memory_space<vmem>>) attributes {dimension_semantics = [#tpu.dimension_semantics<parallel>], iteration_bounds = array<i64: 2>, scalar_prefetch = 0 : i64, scratch_operands = 0 : i64, tpu.core_type = #tpu.core_type<tc>, window_params = [{transform_indices = @transform_0, window_bounds = array<i64: 1, 256, 128>}, {pipeline_mode = #tpu.pipeline_mode<synchronous>, transform_indices = @transform_1, window_bounds = array<i64: 128, 32>}, {pipeline_mode = #tpu.pipeline_mode<synchronous>, transform_indices = @transform_2, window_bounds = array<i64: 1, 32>}, {transform_indices = @transform_3, window_bounds = array<i64: 1, 256, 32>}]} {
    %c0 = arith.constant 0 : index
    %c0_0 = arith.constant 0 : index
    %c0_1 = arith.constant 0 : index
    %0 = vector.load %arg1[%c0, %c0_0, %c0_1] : memref<1x256x128xf32, #tpu.memory_space<vmem>>, vector<1x256x128xf32>
    %1 = vector.shape_cast %0 : vector<1x256x128xf32> to vector<256x128xf32>
    %c0_2 = arith.constant 0 : index
    %c0_3 = arith.constant 0 : index
    %2 = vector.load %arg2[%c0_2, %c0_3] : memref<128x32xf32, #tpu.memory_space<vmem>>, vector<128x32xf32>
    %cst = arith.constant dense<0.000000e+00> : vector<256x32xf32>
    %3 = tpu.matmul %1, %2, %cst {dimension_numbers = #tpu.dot_dimension_numbers<[1], [0], [0], [1], [0, 0, 1, 1], [], []>} : vector<256x128xf32>, vector<128x32xf32>, vector<256x32xf32> -> vector<256x32xf32>
    %c0_4 = arith.constant 0 : index
    %c0_5 = arith.constant 0 : index
    %4 = vector.load %arg3[%c0_4, %c0_5] : memref<1x32xf32, #tpu.memory_space<vmem>>, vector<1x32xf32>
    %5 = vector.broadcast %4 : vector<1x32xf32> to vector<256x32xf32>
    %6 = arith.addf %3, %5 : vector<256x32xf32>
    %cst_6 = arith.constant 0.000000e+00 : f32
    %7 = vector.broadcast %cst_6 : f32 to vector<256x32xf32>
    %8 = arith.maximumf %6, %7 : vector<256x32xf32>
    %c0_7 = arith.constant 0 : index
    %c0_8 = arith.constant 0 : index
    %c0_9 = arith.constant 0 : index
    %9 = vector.load %arg4[%c0_7, %c0_8, %c0_9] : memref<1x256x32xf32, #tpu.memory_space<vmem>>, vector<1x256x32xf32>
    %10 = vector.shape_cast %9 : vector<1x256x32xf32> to vector<256x32xf32>
    %11 = vector.shape_cast %8 : vector<256x32xf32> to vector<1x256x32xf32>
    tpu.vector_store %arg4[%c0_7, %c0_8, %c0_9], %11 {strides = array<i32>} : memref<1x256x32xf32, #tpu.memory_space<vmem>>, vector<1x256x32xf32>,
    return
  }
  func.func @transform_0(%arg0: i32) -> (i32, i32, i32) {
    %c0_i32 = arith.constant 0 : i32
    %c0_i32_0 = arith.constant 0 : i32
    %c0_i32_1 = arith.constant 0 : i32
    return %arg0, %c0_i32, %c0_i32_0 : i32, i32, i32
  }
  func.func @transform_1(%arg0: i32) -> (i32, i32) {
    %c0_i32 = arith.constant 0 : i32
    %c0_i32_0 = arith.constant 0 : i32
    %c0_i32_1 = arith.constant 0 : i32
    return %c0_i32, %c0_i32_0 : i32, i32
  }
  func.func @transform_2(%arg0: i32) -> (i32, i32) {
    %c0_i32 = arith.constant 0 : i32
    %c0_i32_0 = arith.constant 0 : i32
    %c0_i32_1 = arith.constant 0 : i32
    return %c0_i32, %c0_i32_0 : i32, i32
  }
  func.func @transform_3(%arg0: i32) -> (i32, i32, i32) {
    %c0_i32 = arith.constant 0 : i32
    %c0_i32_0 = arith.constant 0 : i32
    %c0_i32_1 = arith.constant 0 : i32
    return %arg0, %c0_i32, %c0_i32_0 : i32, i32, i32
  }
}

module attributes {stable_mosaic.version = 11 : i64} {
  func.func @encoder_kernel(%arg0: i32, %arg1: memref<1x256x128xf32, #tpu.memory_space<vmem>>, %arg2: memref<128x32xf32, #tpu.memory_space<vmem>>, %arg3: memref<1x32xf32, #tpu.memory_space<vmem>>, %arg4: memref<1x256x32xf32, #tpu.memory_space<vmem>>) attributes {dimension_semantics = [#tpu.dimension_semantics<parallel>], iteration_bounds = array<i64: 2>, scalar_prefetch = 0 : i64, scratch_operands = 0 : i64, tpu.core_type = #tpu.core_type<tc>, window_params = [{transform_indices = @transform_0, window_bounds = array<i64: 1, 256, 128>}, {pipeline_mode = #tpu.pipeline_mode<synchronous>, transform_indices = @transform_1, window_bounds = array<i64: 128, 32>}, {pipeline_mode = #tpu.pipeline_mode<synchronous>, transform_indices = @transform_2, window_bounds = array<i64: 1, 32>}, {transform_indices = @transform_3, window_bounds = array<i64: 1, 256, 32>}]} {
    %c0 = arith.constant 0 : index
    %c0_0 = arith.constant 0 : index
    %c0_1 = arith.constant 0 : index
    %0 = vector.load %arg1[%c0, %c0_0, %c0_1] : memref<1x256x128xf32, #tpu.memory_space<vmem>>, vector<1x256x128xf32>
    %1 = vector.shape_cast %0 : vector<1x256x128xf32> to vector<256x128xf32>
    %c0_2 = arith.constant 0 : index
    %c0_3 = arith.constant 0 : index
    %2 = vector.load %arg2[%c0_2, %c0_3] : memref<128x32xf32, #tpu.memory_space<vmem>>, vector<128x32xf32>
    %cst = arith.constant dense<0.000000e+00> : vector<256x32xf32>
    %3 = tpu.matmul %1, %2, %cst {dimension_numbers = #tpu.dot_dimension_numbers<[1], [0], [0], [1], [0, 0, 1, 1], [], []>} : vector<256x128xf32>, vector<128x32xf32>, vector<256x32xf32> -> vector<256x32xf32>
    %c0_4 = arith.constant 0 : index
    %c0_5 = arith.constant 0 : index
    %4 = vector.load %arg3[%c0_4, %c0_5] : memref<1x32xf32, #tpu.memory_space<vmem>>, vector<1x32xf32>
    %5 = vector.broadcast %4 : vector<1x32xf32> to vector<256x32xf32>
    %6 = arith.addf %3, %5 : vector<256x32xf32>
    %cst_6 = arith.constant 0.000000e+00 : f32
    %7 = vector.broadcast %cst_6 : f32 to vector<256x32xf32>
    %8 = arith.maximumf %6, %7 : vector<256x32xf32>
    %c0_7 = arith.constant 0 : index
    %c0_8 = arith.constant 0 : index
    %c0_9 = arith.constant 0 : index
    %9 = vector.load %arg4[%c0_7, %c0_8, %c0_9] : memref<1x256x32xf32, #tpu.memory_space<vmem>>, vector<1x256x32xf32>
    %10 = vector.shape_cast %9 : vector<1x256x32xf32> to vector<256x32xf32>
    %11 = vector.shape_cast %8 : vector<256x32xf32> to vector<1x256x32xf32>
    tpu.vector_store %arg4[%c0_7, %c0_8, %c0_9], %11 {strides = array<i32>} : memref<1x256x32xf32, #tpu.memory_space<vmem>>, vector<1x256x32xf32>,
    return
  }
  func.func @transform_0(%arg0: i32) -> (i32, i32, i32) {
    %c0_i32 = arith.constant 0 : i32
    %c0_i32_0 = arith.constant 0 : i32
    %c0_i32_1 = arith.constant 0 : i32
    return %arg0, %c0_i32, %c0_i32_0 : i32, i32, i32
  }
  func.func @transform_1(%arg0: i32) -> (i32, i32) {
    %c0_i32 = arith.constant 0 : i32
    %c0_i32_0 = arith.constant 0 : i32
    %c0_i32_1 = arith.constant 0 : i32
    return %c0_i32, %c0_i32_0 : i32, i32
  }
  func.func @transform_2(%arg0: i32) -> (i32, i32) {
    %c0_i32 = arith.constant 0 : i32
    %c0_i32_0 = arith.constant 0 : i32
    %c0_i32_1 = arith.constant 0 : i32
    return %c0_i32, %c0_i32_0 : i32, i32
  }
  func.func @transform_3(%arg0: i32) -> (i32, i32, i32) {
    %c0_i32 = arith.constant 0 : i32
    %c0_i32_0 = arith.constant 0 : i32
    %c0_i32_1 = arith.constant 0 : i32
    return %arg0, %c0_i32, %c0_i32_0 : i32, i32, i32
  }
}

</mosaic_0001>

<bundles_post_ra>
// kernel: tpu_custom_call.1
= control target key start
LH: loop header
LB: loop body
LE: loop exit
PB: predicated region body
PF: predicated region fallthrough
CT: control target
= control target key end

     0   :  { %8 = vsyncpa [#allocation3], 0  ;;  %s1192_s0 = inlined_call_operand.hbm [shape: f32[2,256,128], index: 0, kind: input, shape index: {}]   ;;  %s1193_s1 = inlined_call_operand.vmem [shape: f32[128,32], index: 1, kind: input, shape index: {}]   ;;  %s1194_s2 = inlined_call_operand.vmem [shape: f32[1,32], index: 2, kind: input, shape index: {}]   ;;  %s1195_s3 = inlined_call_operand.vmem [shape: f32[2,256,32], index: 3, kind: output, shape index: {}]  }
   0x1   :  { %10 = vsyncpa [#allocation3 + $0x1], 0  ;;  %s906_s12 = smov 0   ;;  %s908_s13 = smov 0  }
   0x2   :  { %s910_s14 = smov 0   ;;  %s912_s15 = smov 0  }
   0x3 LB: > { %s925_s16 = sadd.s32 4294967295, %s881_s15   ;;  %s928_s17 = sadd.s32 1, %s881_s15   ;;  %s881_s15 = sphi %s912_s15, %s1204_s15   ;;  %s877_s14 = sphi %s910_s14, %s1203_s14   ;;  %s873_s13 = sphi %s908_s13, %s1202_s13   ;;  %s869_s12 = sphi %s906_s12, %s1201_s12  }
   0x4   : > { %s20_s18 = ssub.s32 %s881_s15, %s928_s17  ;;  %s23_s19 = sadd.s32 1, %s877_s14 }
   0x5   : > { %p21_p0 = scmp.eq.s32.totalorder %s20_s18, 0  ;;  %p30_p1 = scmp.ne.s32.totalorder %s877_s14, %s873_s13 }
   0x6   : > { %p31_p2 = scmp.eq.s32.totalorder %s881_s15, 0  ;;  %p36_p3 = scmp.ne.s32.totalorder %s873_s13, %s869_s12 }
   0x7   : > { %s938_s20 = scalar_select %p21_p0, %s877_s14, %s23_s19  }
   0x8   : > { %p32_p4 = por %p31_p2, %p30_p1  ;;  %p37_p5 = scmp.eq.s32.totalorder %s925_s16, 0 }
   0x9   : > { %p784_p6 = scmp.lt.s32.totalorder %s881_s15, 2  ;;  %s134_s22 = sand.u32 1, %s877_s14  }
   0xa   : > { %p942_p7 = por %p37_p5, %p36_p3  ;;  %s606_s23 = sshll.u32 %s134_s22, 8 }
   0xb   : > { %s616_s24 = sshll.u32 %s881_s15, 12  ;;  %s138_s28 = scalar_lea.vmem [#allocation2], %s606_s23 }
   0xc   : > { %s1197_s21 = scalar_select %p942_p7, 1, 0 }
   0xd   : > { %s951_s27 = scalar_lea.hbm %s1192_s0, %s616_s24  ;;  %s145_s29 = sshll.u32 %s138_s28, 4  ;;  %s953_s29 = int_to_ptr.vmem [resolvable:$true] %s145_s29 }
   0xe   : > { %p955_p8 = pnand %p784_p6, %p32_p4  ;;  %s960_s4 = scalar_lea.sflag [#allocation3], %s134_s22 }
   0xf   : > { %s819_s5 = scalar_lea.hbm %s951_s27, 4096  ;;  %s824_s8 = scalar_lea.hbm %s1192_s0, 8192 }
  0x10   : > { %p820_p10 = scmp.ne.s32.totalorder %s951_s27, %s819_s5  ;;  %p821_p11 = pneg %p955_p8 }
  0x11   : > { %p825_p0 = scmp.lt.s32.totalorder %s951_s27, %s1192_s0  ;;  %p826_p1 = scmp.lt.s32.totalorder %s824_s8, %s819_s5 }
  0x12   : > { %p822_p12 = pnand %p821_p11, %p820_p10 }
  0x13   : > { %p827_p2 = por %p826_p1, %p825_p0 }
  0x14   : > { %p823_p13 = pneg %p822_p12 }
  0x16   : > { %p828_p3 = pnand %p827_p2, %p823_p13 }
  0x18   : > { %831 = shalt.err (!%p828_p3)
}
  0x19   : > { %s832_s11 = scalar_lea.vmem %s953_s29, 4096  ;;  %s883_s12 = smov [#allocation2]  }
  0x1a   : > { %p833_p4 = scmp.ne.s32.totalorder %s953_s29, %s832_s11  ;;  %s837_s18 = sshll.u32 %s883_s12, 4  ;;  %s838_s18 = int_to_ptr.vmem [resolvable:$false] %s837_s18 }
  0x1b   : > { %s839_s19 = scalar_lea.vmem %s838_s18, 8192  ;;  %p840_p10 = scmp.lt.s32.totalorder %s953_s29, %s838_s18 }
  0x1c   : > { %p835_p5 = pnand %p833_p4, %p821_p11  ;;  %p841_p12 = scmp.lt.s32.totalorder %s839_s19, %s832_s11 }
  0x1e   : > { %p836_p6 = pneg %p835_p5  ;;  %p842_p9 = por %p841_p12, %p840_p10 }
  0x20   : > { %p843_p7 = pnand %p842_p9, %p836_p6 }
  0x22   : > { %846 = shalt.err (!%p843_p7)
}
  0x23   : > { %s884_s22 = smov 128   ;;  %s885_s23 = smov 8  }
  0x24   : > { %783 = dma.hbm_to_vmem [thread:$0]  (!%p955_p8), %s951_s27, 4096, %s953_s29, %s960_s4, %s884_s22, %s884_s22, %s885_s23  }
  0x25   : > { %p153_p11 = scmp.lt.s32.totalorder %s881_s15, 3  ;;  %p1199_p13 = scmp.ge.s32.totalorder %s881_s15, 1 }
  0x27   : > { %p154_p0 = pnand %p1199_p13, %p153_p11 }
  0x28   : > { %s159_s24 = sand.u32 (!%p154_p0), 1, %s873_s13   ;;  %p1200_p7 = scmp.ne.s32.totalorder (!%p154_p0), %s1197_s21, 0 }
  0x29   : > { %157 = sbr.rel (%p154_p0) target bundleno = 309 (0x135), region = 32  ;;  %s610_s25 = sshll.u32 (!%p154_p0), %s159_s24, 8 }
  0x2a   : > { %s160_s26 = scalar_lea.sflag (!%p154_p0), [#allocation3], %s159_s24  ;;  %s985_s28 = scalar_lea.vmem (!%p154_p0), [#allocation2], %s610_s25 }
  0x2e   : > { %864 = dma.done.wait (%p1200_p7), %s160_s26, 4096  }
  0x2f   : > { %866 = vsyncadd (%p1200_p7), %s160_s26, 4294963200  ;;  %v238_v0 = vld [vmem:[%s1193_s1 + $0x78] sm:$0xff]  ;;  %v237_v1 = vld [vmem:[%s1193_s1 + $0x70] sm:$0xff]  ;;  %p186_p8 = scmp.lt.s32.totalorder %s925_s16, 1  ;;  %vm503_vm0 = vcmask 261120  }
  0x30   : > { %666 = vmatprep.subr.mxu0 %v238_v0  ;;  %746 = vmatprep.subr.mxu1 %v238_v0  ;;  %v236_v2 = vld [vmem:[%s1193_s1 + $0x68] sm:$0xff]  ;;  %v235_v3 = vld [vmem:[%s1193_s1 + $0x60] sm:$0xff]  ;;  %v234_v4 = vld [vmem:[%s1193_s1 + $0x58] sm:$0xff] }
  0x31   : > { %667 = vmatpush3.msra.mxu0 %v238_v0  ;;  %762 = vmatpush3.msra.mxu1 %v238_v0  ;;  %v233_v5 = vld [vmem:[%s1193_s1 + $0x50] sm:$0xff]  ;;  %v232_v6 = vld [vmem:[%s1193_s1 + $0x48] sm:$0xff]  ;;  %v231_v7 = vld [vmem:[%s1193_s1 + $0x40] sm:$0xff]  ;;  %s1206_s16 = smov (!%p186_p8, %s925_s16), 1 }
  0x32   : > { %668 = vmatprep.subr.mxu0 %v237_v1  ;;  %747 = vmatprep.subr.mxu1 %v237_v1  ;;  %v230_v8 = vld [vmem:[%s1193_s1 + $0x38] sm:$0xff]  ;;  %v229_v9 = vld [vmem:[%s1193_s1 + $0x30] sm:$0xff]  ;;  %v228_v10 = vld [vmem:[%s1193_s1 + $0x28] sm:$0xff]  ;;  %s617_s12 = sshll.u32 %s1206_s16, 8 }
  0x33   : > { %669 = vmatpush3.msra.mxu0 %v237_v1  ;;  %763 = vmatpush3.msra.mxu1 %v237_v1  ;;  %v227_v11 = vld [vmem:[%s1193_s1 + $0x20] sm:$0xff]  ;;  %v226_v12 = vld [vmem:[%s1193_s1 + $0x18] sm:$0xff]  ;;  %v225_v13 = vld [vmem:[%s1193_s1 + $0x10] sm:$0xff] }
  0x34   : > { %670 = vmatprep.subr.mxu0 %v236_v2  ;;  %748 = vmatprep.subr.mxu1 %v236_v2  ;;  %v224_v14 = vld [vmem:[%s1193_s1 + $0x8] sm:$0xff]  ;;  %v223_v15 = vld [vmem:[%s1193_s1] sm:$0xff]  ;;  %v193_v20 = vld [vmem:[%s985_s28 + $0x10] sm:$0xff] }
  0x35   : > { %671 = vmatpush3.msra.mxu0 %v236_v2  ;;  %764 = vmatpush3.msra.mxu1 %v236_v2  ;;  %v191_v16 = vld [vmem:[%s985_s28] sm:$0xff]  ;;  %v192_v18 = vld [vmem:[%s985_s28 + $0x8] sm:$0xff]  ;;  %v209_v21 = vld [vmem:[%s985_s28 + $0x90] sm:$0xff] }
  0x36   : > { %672 = vmatprep.subr.mxu0 %v235_v3  ;;  %749 = vmatprep.subr.mxu1 %v235_v3  ;;  %v207_v17 = vld [vmem:[%s985_s28 + $0x80] sm:$0xff]  ;;  %v208_v19 = vld [vmem:[%s985_s28 + $0x88] sm:$0xff]  ;;  %v194_v22 = vld [vmem:[%s985_s28 + $0x18] sm:$0xff] }
  0x37   : > { %673 = vmatpush3.msra.mxu0 %v235_v3  ;;  %765 = vmatpush3.msra.mxu1 %v235_v3  ;;  %v210_v23 = vld [vmem:[%s985_s28 + $0x98] sm:$0xff]  ;;  %v195_v24 = vld [vmem:[%s985_s28 + $0x20] sm:$0xff]  ;;  %v196_v26 = vld [vmem:[%s985_s28 + $0x28] sm:$0xff] }
  0x38   : > { %674 = vmatprep.subr.mxu0 %v234_v4  ;;  %750 = vmatprep.subr.mxu1 %v234_v4  ;;  %v211_v25 = vld [vmem:[%s985_s28 + $0xa0] sm:$0xff]  ;;  %v212_v27 = vld [vmem:[%s985_s28 + $0xa8] sm:$0xff]  ;;  %v197_v28 = vld [vmem:[%s985_s28 + $0x30] sm:$0xff] }
  0x39   : > { %675 = vmatpush3.msra.mxu0 %v234_v4  ;;  %766 = vmatpush3.msra.mxu1 %v234_v4  ;;  %v213_v29 = vld [vmem:[%s985_s28 + $0xb0] sm:$0xff]  ;;  %v198_v30 = vld [vmem:[%s985_s28 + $0x38] sm:$0xff]  ;;  %v199_v32 = vld [vmem:[%s985_s28 + $0x40] sm:$0xff] }
  0x3a   : > { %676 = vmatprep.subr.mxu0 %v233_v5  ;;  %751 = vmatprep.subr.mxu1 %v233_v5  ;;  %v214_v31 = vld [vmem:[%s985_s28 + $0xb8] sm:$0xff]  ;;  %v215_v33 = vld [vmem:[%s985_s28 + $0xc0] sm:$0xff]  ;;  %v200_v34 = vld [vmem:[%s985_s28 + $0x48] sm:$0xff] }
  0x3b   : > { %677 = vmatpush3.msra.mxu0 %v233_v5  ;;  %767 = vmatpush3.msra.mxu1 %v233_v5  ;;  %v216_v35 = vld [vmem:[%s985_s28 + $0xc8] sm:$0xff]  ;;  %v201_v36 = vld [vmem:[%s985_s28 + $0x50] sm:$0xff]  ;;  %v202_v38 = vld [vmem:[%s985_s28 + $0x58] sm:$0xff] }
  0x3c   : > { %678 = vmatprep.subr.mxu0 %v232_v6  ;;  %752 = vmatprep.subr.mxu1 %v232_v6  ;;  %v217_v37 = vld [vmem:[%s985_s28 + $0xd0] sm:$0xff]  ;;  %v218_v39 = vld [vmem:[%s985_s28 + $0xd8] sm:$0xff]  ;;  %v203_v40 = vld [vmem:[%s985_s28 + $0x60] sm:$0xff] }
  0x3d   : > { %679 = vmatpush3.msra.mxu0 %v232_v6  ;;  %768 = vmatpush3.msra.mxu1 %v232_v6  ;;  %v219_v41 = vld [vmem:[%s985_s28 + $0xe0] sm:$0xff]  ;;  %v204_v42 = vld [vmem:[%s985_s28 + $0x68] sm:$0xff]  ;;  %v205_v44 = vld [vmem:[%s985_s28 + $0x70] sm:$0xff] }
  0x3e   : > { %680 = vmatprep.subr.mxu0 %v231_v7  ;;  %753 = vmatprep.subr.mxu1 %v231_v7  ;;  %v220_v43 = vld [vmem:[%s985_s28 + $0xe8] sm:$0xff]  ;;  %v221_v45 = vld [vmem:[%s985_s28 + $0xf0] sm:$0xff]  ;;  %v206_v46 = vld [vmem:[%s985_s28 + $0x78] sm:$0xff] }
  0x3f   : > { %681 = vmatpush3.msra.mxu0 %v231_v7  ;;  %769 = vmatpush3.msra.mxu1 %v231_v7  ;;  %v222_v47 = vld [vmem:[%s985_s28 + $0xf8] sm:$0xff]  ;;  %v1076_v48 = vld [vmem:[%s1194_s2] ss:$0 sm:$0xff]  ;;  %s1083_s28 = scalar_lea.vmem %s1195_s3, %s617_s12 }
  0x40   : > { %682 = vmatprep.subr.mxu0 %v230_v8  ;;  %754 = vmatprep.subr.mxu1 %v230_v8 }
  0x41   : > { %683 = vmatpush3.msra.mxu0 %v230_v8  ;;  %770 = vmatpush3.msra.mxu1 %v230_v8 }
  0x42   : > { %684 = vmatprep.subr.mxu0 %v229_v9  ;;  %755 = vmatprep.subr.mxu1 %v229_v9 }
  0x43   : > { %685 = vmatpush3.msra.mxu0 %v229_v9  ;;  %771 = vmatpush3.msra.mxu1 %v229_v9 }
  0x44   : > { %686 = vmatprep.subr.mxu0 %v228_v10  ;;  %756 = vmatprep.subr.mxu1 %v228_v10 }
  0x45   : > { %687 = vmatpush3.msra.mxu0 %v228_v10  ;;  %772 = vmatpush3.msra.mxu1 %v228_v10 }
  0x46   : > { %688 = vmatprep.subr.mxu0 %v227_v11  ;;  %757 = vmatprep.subr.mxu1 %v227_v11 }
  0x47   : > { %689 = vmatpush3.msra.mxu0 %v227_v11  ;;  %773 = vmatpush3.msra.mxu1 %v227_v11 }
  0x48   : > { %690 = vmatprep.subr.mxu0 %v226_v12  ;;  %758 = vmatprep.subr.mxu1 %v226_v12 }
  0x49   : > { %691 = vmatpush3.msra.mxu0 %v226_v12  ;;  %774 = vmatpush3.msra.mxu1 %v226_v12 }
  0x4a   : > { %692 = vmatprep.subr.mxu0 %v225_v13  ;;  %759 = vmatprep.subr.mxu1 %v225_v13 }
  0x4b   : > { %693 = vmatpush3.msra.mxu0 %v225_v13  ;;  %775 = vmatpush3.msra.mxu1 %v225_v13 }
  0x4c   : > { %694 = vmatprep.subr.mxu0 %v224_v14  ;;  %760 = vmatprep.subr.mxu1 %v224_v14 }
  0x4d   : > { %695 = vmatpush3.msra.mxu0 %v224_v14  ;;  %776 = vmatpush3.msra.mxu1 %v224_v14 }
  0x4e   : > { %696 = vmatprep.subr.mxu0 %v223_v15  ;;  %761 = vmatprep.subr.mxu1 %v223_v15 }
  0x4f   : > { %697 = vmatpush3.msra.mxu0 %v223_v15  ;;  %777 = vmatpush3.msra.mxu1 %v223_v15 }
  0x50   : > { %698 = vmatprep.mubr.f32.mxu0 %v191_v16  ;;  %722 = vmatprep.mubr.f32.mxu1 %v207_v17 }
  0x51   : > { %699 = vmatmul.mubr.f32.vlgmr.msra.gmra.mxu0 %v192_v18  ;;  %723 = vmatmul.mubr.f32.vlgmr.msra.gmra.mxu1 %v208_v19 }
  0x52   : > { %701 = vmatprep.mubr.f32.mxu0 %v193_v20  ;;  %725 = vmatprep.mubr.f32.mxu1 %v209_v21 }
  0x55   : > { %702 = vmatmul.mubr.f32.gmra.mxu0 %v194_v22  ;;  %726 = vmatmul.mubr.f32.gmra.mxu1 %v210_v23 }
  0x56   : > { %704 = vmatprep.mubr.f32.mxu0 %v195_v24  ;;  %728 = vmatprep.mubr.f32.mxu1 %v211_v25 }
  0x59   : > { %705 = vmatmul.mubr.f32.gmra.mxu0 %v196_v26  ;;  %729 = vmatmul.mubr.f32.gmra.mxu1 %v212_v27 }
  0x5a   : > { %707 = vmatprep.mubr.f32.mxu0 %v197_v28  ;;  %731 = vmatprep.mubr.f32.mxu1 %v213_v29 }
  0x5d   : > { %708 = vmatmul.mubr.f32.gmra.mxu0 %v198_v30  ;;  %732 = vmatmul.mubr.f32.gmra.mxu1 %v214_v31 }
  0x5e   : > { %710 = vmatprep.mubr.f32.mxu0 %v199_v32  ;;  %734 = vmatprep.mubr.f32.mxu1 %v215_v33 }
  0x61   : > { %711 = vmatmul.mubr.f32.gmra.mxu0 %v200_v34  ;;  %735 = vmatmul.mubr.f32.gmra.mxu1 %v216_v35 }
  0x62   : > { %713 = vmatprep.mubr.f32.mxu0 %v201_v36  ;;  %737 = vmatprep.mubr.f32.mxu1 %v217_v37 }
  0x65   : > { %714 = vmatmul.mubr.f32.gmra.mxu0 %v202_v38  ;;  %738 = vmatmul.mubr.f32.gmra.mxu1 %v218_v39 }
  0x66   : > { %716 = vmatprep.mubr.f32.mxu0 %v203_v40  ;;  %740 = vmatprep.mubr.f32.mxu1 %v219_v41 }
  0x69   : > { %717 = vmatmul.mubr.f32.gmra.mxu0 %v204_v42  ;;  %741 = vmatmul.mubr.f32.gmra.mxu1 %v220_v43 }
  0x6a   : > { %719 = vmatprep.mubr.f32.mxu0 %v205_v44  ;;  %743 = vmatprep.mubr.f32.mxu1 %v221_v45 }
  0x6d   : > { %720 = vmatmul.mubr.f32.gmra.mxu0 %v206_v46  ;;  %744 = vmatmul.mubr.f32.gmra.mxu1 %v222_v47 }
 0x111   : > { %v700_v49 = vpop.f32.mrf.mxu0  ;;  %v724_v50 = vpop.f32.mrf.mxu1 }
 0x112   : > { %v318_v51 = vadd.f32 %v700_v49, %v1076_v48  ;;  %v398_v52 = vadd.f32 %v724_v50, %v1076_v48 }
 0x113   : > { %v312_v53 = vpop.f32.mrf.mxu0  ;;  %v392_v54 = vpop.f32.mrf.mxu1 }
 0x114   : > { %v472_v55 = vmax.f32 %v318_v51, 0.0  ;;  %v488_v56 = vmax.f32 %v398_v52, 0.0  ;;  %v313_v57 = vadd.f32 %v1076_v48, %v312_v53  ;;  %v393_v58 = vadd.f32 %v1076_v48, %v392_v54 }
 0x115   : > { %v703_v59 = vpop.f32.mrf.mxu0  ;;  %v727_v60 = vpop.f32.mrf.mxu1 }
 0x116   : > { %505 = vst.msk [vmem:[%s1083_s28 + $0x8] sm:$0xff] %vm503_vm0, %v472_v55  ;;  %521 = vst.msk [vmem:[%s1083_s28 + $0x88] sm:$0xff] %vm503_vm0, %v488_v56  ;;  %v471_v61 = vmax.f32 %v313_v57, 0.0  ;;  %v487_v62 = vmax.f32 %v393_v58, 0.0  ;;  %v328_v63 = vadd.f32 %v703_v59, %v1076_v48  ;;  %v408_v0 = vadd.f32 %v727_v60, %v1076_v48 }
 0x117   : > { %v322_v1 = vpop.f32.mrf.mxu0  ;;  %v402_v2 = vpop.f32.mrf.mxu1 }
 0x118   : > { %504 = vst.msk [vmem:[%s1083_s28] sm:$0xff] %vm503_vm0, %v471_v61  ;;  %520 = vst.msk [vmem:[%s1083_s28 + $0x80] sm:$0xff] %vm503_vm0, %v487_v62  ;;  %v474_v3 = vmax.f32 %v328_v63, 0.0  ;;  %v490_v4 = vmax.f32 %v408_v0, 0.0  ;;  %v323_v5 = vadd.f32 %v1076_v48, %v322_v1  ;;  %v403_v6 = vadd.f32 %v1076_v48, %v402_v2 }
 0x119   : > { %v706_v7 = vpop.f32.mrf.mxu0  ;;  %v730_v8 = vpop.f32.mrf.mxu1 }
 0x11a   : > { %507 = vst.msk [vmem:[%s1083_s28 + $0x18] sm:$0xff] %vm503_vm0, %v474_v3  ;;  %523 = vst.msk [vmem:[%s1083_s28 + $0x98] sm:$0xff] %vm503_vm0, %v490_v4  ;;  %v473_v9 = vmax.f32 %v323_v5, 0.0  ;;  %v489_v10 = vmax.f32 %v403_v6, 0.0  ;;  %v338_v11 = vadd.f32 %v706_v7, %v1076_v48  ;;  %v418_v12 = vadd.f32 %v730_v8, %v1076_v48 }
 0x11b   : > { %v332_v13 = vpop.f32.mrf.mxu0  ;;  %v412_v14 = vpop.f32.mrf.mxu1 }
 0x11c   : > { %506 = vst.msk [vmem:[%s1083_s28 + $0x10] sm:$0xff] %vm503_vm0, %v473_v9  ;;  %522 = vst.msk [vmem:[%s1083_s28 + $0x90] sm:$0xff] %vm503_vm0, %v489_v10  ;;  %v476_v15 = vmax.f32 %v338_v11, 0.0  ;;  %v492_v16 = vmax.f32 %v418_v12, 0.0  ;;  %v333_v17 = vadd.f32 %v1076_v48, %v332_v13  ;;  %v413_v18 = vadd.f32 %v1076_v48, %v412_v14 }
 0x11d   : > { %v709_v19 = vpop.f32.mrf.mxu0  ;;  %v733_v20 = vpop.f32.mrf.mxu1 }
 0x11e   : > { %509 = vst.msk [vmem:[%s1083_s28 + $0x28] sm:$0xff] %vm503_vm0, %v476_v15  ;;  %525 = vst.msk [vmem:[%s1083_s28 + $0xa8] sm:$0xff] %vm503_vm0, %v492_v16  ;;  %v475_v21 = vmax.f32 %v333_v17, 0.0  ;;  %v491_v22 = vmax.f32 %v413_v18, 0.0  ;;  %v348_v23 = vadd.f32 %v709_v19, %v1076_v48  ;;  %v428_v24 = vadd.f32 %v733_v20, %v1076_v48 }
 0x11f   : > { %v342_v25 = vpop.f32.mrf.mxu0  ;;  %v422_v26 = vpop.f32.mrf.mxu1 }
 0x120   : > { %508 = vst.msk [vmem:[%s1083_s28 + $0x20] sm:$0xff] %vm503_vm0, %v475_v21  ;;  %524 = vst.msk [vmem:[%s1083_s28 + $0xa0] sm:$0xff] %vm503_vm0, %v491_v22  ;;  %v478_v27 = vmax.f32 %v348_v23, 0.0  ;;  %v494_v28 = vmax.f32 %v428_v24, 0.0  ;;  %v343_v29 = vadd.f32 %v1076_v48, %v342_v25  ;;  %v423_v30 = vadd.f32 %v1076_v48, %v422_v26 }
 0x121   : > { %v712_v31 = vpop.f32.mrf.mxu0  ;;  %v736_v32 = vpop.f32.mrf.mxu1 }
 0x122   : > { %511 = vst.msk [vmem:[%s1083_s28 + $0x38] sm:$0xff] %vm503_vm0, %v478_v27  ;;  %527 = vst.msk [vmem:[%s1083_s28 + $0xb8] sm:$0xff] %vm503_vm0, %v494_v28  ;;  %v477_v33 = vmax.f32 %v343_v29, 0.0  ;;  %v493_v34 = vmax.f32 %v423_v30, 0.0  ;;  %v358_v35 = vadd.f32 %v712_v31, %v1076_v48  ;;  %v438_v36 = vadd.f32 %v736_v32, %v1076_v48 }
 0x123   : > { %v352_v37 = vpop.f32.mrf.mxu0  ;;  %v432_v38 = vpop.f32.mrf.mxu1 }
 0x124   : > { %510 = vst.msk [vmem:[%s1083_s28 + $0x30] sm:$0xff] %vm503_vm0, %v477_v33  ;;  %526 = vst.msk [vmem:[%s1083_s28 + $0xb0] sm:$0xff] %vm503_vm0, %v493_v34  ;;  %v480_v39 = vmax.f32 %v358_v35, 0.0  ;;  %v496_v40 = vmax.f32 %v438_v36, 0.0  ;;  %v353_v41 = vadd.f32 %v1076_v48, %v352_v37  ;;  %v433_v42 = vadd.f32 %v1076_v48, %v432_v38 }
 0x125   : > { %v715_v43 = vpop.f32.mrf.mxu0  ;;  %v739_v44 = vpop.f32.mrf.mxu1 }
 0x126   : > { %513 = vst.msk [vmem:[%s1083_s28 + $0x48] sm:$0xff] %vm503_vm0, %v480_v39  ;;  %529 = vst.msk [vmem:[%s1083_s28 + $0xc8] sm:$0xff] %vm503_vm0, %v496_v40  ;;  %v479_v45 = vmax.f32 %v353_v41, 0.0  ;;  %v495_v46 = vmax.f32 %v433_v42, 0.0  ;;  %v368_v47 = vadd.f32 %v715_v43, %v1076_v48  ;;  %v448_v49 = vadd.f32 %v739_v44, %v1076_v48 }
 0x127   : > { %v362_v50 = vpop.f32.mrf.mxu0  ;;  %v442_v51 = vpop.f32.mrf.mxu1 }
 0x128   : > { %512 = vst.msk [vmem:[%s1083_s28 + $0x40] sm:$0xff] %vm503_vm0, %v479_v45  ;;  %528 = vst.msk [vmem:[%s1083_s28 + $0xc0] sm:$0xff] %vm503_vm0, %v495_v46  ;;  %v482_v52 = vmax.f32 %v368_v47, 0.0  ;;  %v498_v53 = vmax.f32 %v448_v49, 0.0  ;;  %v363_v54 = vadd.f32 %v1076_v48, %v362_v50  ;;  %v443_v55 = vadd.f32 %v1076_v48, %v442_v51 }
 0x129   : > { %v718_v56 = vpop.f32.mrf.mxu0  ;;  %v742_v57 = vpop.f32.mrf.mxu1 }
 0x12a   : > { %515 = vst.msk [vmem:[%s1083_s28 + $0x58] sm:$0xff] %vm503_vm0, %v482_v52  ;;  %531 = vst.msk [vmem:[%s1083_s28 + $0xd8] sm:$0xff] %vm503_vm0, %v498_v53  ;;  %v481_v58 = vmax.f32 %v363_v54, 0.0  ;;  %v497_v59 = vmax.f32 %v443_v55, 0.0  ;;  %v378_v60 = vadd.f32 %v718_v56, %v1076_v48  ;;  %v458_v61 = vadd.f32 %v742_v57, %v1076_v48 }
 0x12b   : > { %v372_v62 = vpop.f32.mrf.mxu0  ;;  %v452_v63 = vpop.f32.mrf.mxu1 }
 0x12c   : > { %514 = vst.msk [vmem:[%s1083_s28 + $0x50] sm:$0xff] %vm503_vm0, %v481_v58  ;;  %530 = vst.msk [vmem:[%s1083_s28 + $0xd0] sm:$0xff] %vm503_vm0, %v497_v59  ;;  %v484_v0 = vmax.f32 %v378_v60, 0.0  ;;  %v500_v1 = vmax.f32 %v458_v61, 0.0  ;;  %v373_v2 = vadd.f32 %v1076_v48, %v372_v62  ;;  %v453_v3 = vadd.f32 %v1076_v48, %v452_v63 }
 0x12d   : > { %v721_v4 = vpop.f32.mrf.mxu0  ;;  %v745_v5 = vpop.f32.mrf.mxu1 }
 0x12e   : > { %517 = vst.msk [vmem:[%s1083_s28 + $0x68] sm:$0xff] %vm503_vm0, %v484_v0  ;;  %533 = vst.msk [vmem:[%s1083_s28 + $0xe8] sm:$0xff] %vm503_vm0, %v500_v1  ;;  %v483_v6 = vmax.f32 %v373_v2, 0.0  ;;  %v499_v7 = vmax.f32 %v453_v3, 0.0  ;;  %v388_v8 = vadd.f32 %v721_v4, %v1076_v48  ;;  %v468_v9 = vadd.f32 %v745_v5, %v1076_v48 }
 0x12f   : > { %v382_v10 = vpop.f32.mrf.mxu0  ;;  %v462_v11 = vpop.f32.mrf.mxu1 }
 0x130   : > { %516 = vst.msk [vmem:[%s1083_s28 + $0x60] sm:$0xff] %vm503_vm0, %v483_v6  ;;  %532 = vst.msk [vmem:[%s1083_s28 + $0xe0] sm:$0xff] %vm503_vm0, %v499_v7  ;;  %v486_v12 = vmax.f32 %v388_v8, 0.0  ;;  %v502_v13 = vmax.f32 %v468_v9, 0.0  ;;  %v383_v14 = vadd.f32 %v1076_v48, %v382_v10  ;;  %v463_v15 = vadd.f32 %v1076_v48, %v462_v11 }
 0x132   : > { %519 = vst.msk [vmem:[%s1083_s28 + $0x78] sm:$0xff] %vm503_vm0, %v486_v12  ;;  %535 = vst.msk [vmem:[%s1083_s28 + $0xf8] sm:$0xff] %vm503_vm0, %v502_v13  ;;  %v485_v16 = vmax.f32 %v383_v14, 0.0  ;;  %v501_v17 = vmax.f32 %v463_v15, 0.0 }
 0x134   : > { %518 = vst.msk [vmem:[%s1083_s28 + $0x70] sm:$0xff] %vm503_vm0, %v485_v16  ;;  %534 = vst.msk [vmem:[%s1083_s28 + $0xf0] sm:$0xff] %vm503_vm0, %v501_v17 }
 0x135 PF: > { %p13_p9 = scmp.ge.s32.totalorder %s928_s17, 4   ;;  %s1201_s12 = smov %s873_s13 }
 0x136   : > { %s1202_s13 = smov %s877_s14  ;;  %s1203_s14 = smov %s938_s20 }
 0x137   : > { %s1204_s15 = smov %s928_s17  ;;  %15 = sbr.rel (!%p13_p9) target bundleno = 3 (0x3), region = 72 }
 0x13c   :  { %557 = vsyncpa [#allocation3], 1 }
 0x13d   :  { %559 = vsyncpa [#allocation3 + $0x1], 1 }

// kernel: tpu_custom_call.1
= control target key start
LH: loop header
LB: loop body
LE: loop exit
PB: predicated region body
PF: predicated region fallthrough
CT: control target
= control target key end

     0   :  { %8 = vsyncpa [#allocation3], 0  ;;  %s1192_s0 = inlined_call_operand.hbm [shape: f32[2,256,128], index: 0, kind: input, shape index: {}]   ;;  %s1193_s1 = inlined_call_operand.vmem [shape: f32[128,32], index: 1, kind: input, shape index: {}]   ;;  %s1194_s2 = inlined_call_operand.vmem [shape: f32[1,32], index: 2, kind: input, shape index: {}]   ;;  %s1195_s3 = inlined_call_operand.vmem [shape: f32[2,256,32], index: 3, kind: output, shape index: {}]  }
   0x1   :  { %10 = vsyncpa [#allocation3 + $0x1], 0  ;;  %s906_s12 = smov 0   ;;  %s908_s13 = smov 0  }
   0x2   :  { %s910_s14 = smov 0   ;;  %s912_s15 = smov 0  }
   0x3 LB: > { %s925_s16 = sadd.s32 4294967295, %s881_s15   ;;  %s928_s17 = sadd.s32 1, %s881_s15   ;;  %s881_s15 = sphi %s912_s15, %s1204_s15   ;;  %s877_s14 = sphi %s910_s14, %s1203_s14   ;;  %s873_s13 = sphi %s908_s13, %s1202_s13   ;;  %s869_s12 = sphi %s906_s12, %s1201_s12  }
   0x4   : > { %s20_s18 = ssub.s32 %s881_s15, %s928_s17  ;;  %s23_s19 = sadd.s32 1, %s877_s14 }
   0x5   : > { %p21_p0 = scmp.eq.s32.totalorder %s20_s18, 0  ;;  %p30_p1 = scmp.ne.s32.totalorder %s877_s14, %s873_s13 }
   0x6   : > { %p31_p2 = scmp.eq.s32.totalorder %s881_s15, 0  ;;  %p36_p3 = scmp.ne.s32.totalorder %s873_s13, %s869_s12 }
   0x7   : > { %s938_s20 = scalar_select %p21_p0, %s877_s14, %s23_s19  }
   0x8   : > { %p32_p4 = por %p31_p2, %p30_p1  ;;  %p37_p5 = scmp.eq.s32.totalorder %s925_s16, 0 }
   0x9   : > { %p784_p6 = scmp.lt.s32.totalorder %s881_s15, 2  ;;  %s134_s22 = sand.u32 1, %s877_s14  }
   0xa   : > { %p942_p7 = por %p37_p5, %p36_p3  ;;  %s606_s23 = sshll.u32 %s134_s22, 8 }
   0xb   : > { %s616_s24 = sshll.u32 %s881_s15, 12  ;;  %s138_s28 = scalar_lea.vmem [#allocation2], %s606_s23 }
   0xc   : > { %s1197_s21 = scalar_select %p942_p7, 1, 0 }
   0xd   : > { %s951_s27 = scalar_lea.hbm %s1192_s0, %s616_s24  ;;  %s145_s29 = sshll.u32 %s138_s28, 4  ;;  %s953_s29 = int_to_ptr.vmem [resolvable:$true] %s145_s29 }
   0xe   : > { %p955_p8 = pnand %p784_p6, %p32_p4  ;;  %s960_s4 = scalar_lea.sflag [#allocation3], %s134_s22 }
   0xf   : > { %s819_s5 = scalar_lea.hbm %s951_s27, 4096  ;;  %s824_s8 = scalar_lea.hbm %s1192_s0, 8192 }
  0x10   : > { %p820_p10 = scmp.ne.s32.totalorder %s951_s27, %s819_s5  ;;  %p821_p11 = pneg %p955_p8 }
  0x11   : > { %p825_p0 = scmp.lt.s32.totalorder %s951_s27, %s1192_s0  ;;  %p826_p1 = scmp.lt.s32.totalorder %s824_s8, %s819_s5 }
  0x12   : > { %p822_p12 = pnand %p821_p11, %p820_p10 }
  0x13   : > { %p827_p2 = por %p826_p1, %p825_p0 }
  0x14   : > { %p823_p13 = pneg %p822_p12 }
  0x16   : > { %p828_p3 = pnand %p827_p2, %p823_p13 }
  0x18   : > { %831 = shalt.err (!%p828_p3)
}
  0x19   : > { %s832_s11 = scalar_lea.vmem %s953_s29, 4096  ;;  %s883_s12 = smov [#allocation2]  }
  0x1a   : > { %p833_p4 = scmp.ne.s32.totalorder %s953_s29, %s832_s11  ;;  %s837_s18 = sshll.u32 %s883_s12, 4  ;;  %s838_s18 = int_to_ptr.vmem [resolvable:$false] %s837_s18 }
  0x1b   : > { %s839_s19 = scalar_lea.vmem %s838_s18, 8192  ;;  %p840_p10 = scmp.lt.s32.totalorder %s953_s29, %s838_s18 }
  0x1c   : > { %p835_p5 = pnand %p833_p4, %p821_p11  ;;  %p841_p12 = scmp.lt.s32.totalorder %s839_s19, %s832_s11 }
  0x1e   : > { %p836_p6 = pneg %p835_p5  ;;  %p842_p9 = por %p841_p12, %p840_p10 }
  0x20   : > { %p843_p7 = pnand %p842_p9, %p836_p6 }
  0x22   : > { %846 = shalt.err (!%p843_p7)
}
  0x23   : > { %s884_s22 = smov 128   ;;  %s885_s23 = smov 8  }
  0x24   : > { %783 = dma.hbm_to_vmem [thread:$0]  (!%p955_p8), %s951_s27, 4096, %s953_s29, %s960_s4, %s884_s22, %s884_s22, %s885_s23  }
  0x25   : > { %p153_p11 = scmp.lt.s32.totalorder %s881_s15, 3  ;;  %p1199_p13 = scmp.ge.s32.totalorder %s881_s15, 1 }
  0x27   : > { %p154_p0 = pnand %p1199_p13, %p153_p11 }
  0x28   : > { %s159_s24 = sand.u32 (!%p154_p0), 1, %s873_s13   ;;  %p1200_p7 = scmp.ne.s32.totalorder (!%p154_p0), %s1197_s21, 0 }
  0x29   : > { %157 = sbr.rel (%p154_p0) target bundleno = 309 (0x135), region = 32  ;;  %s610_s25 = sshll.u32 (!%p154_p0), %s159_s24, 8 }
  0x2a   : > { %s160_s26 = scalar_lea.sflag (!%p154_p0), [#allocation3], %s159_s24  ;;  %s985_s28 = scalar_lea.vmem (!%p154_p0), [#allocation2], %s610_s25 }
  0x2e   : > { %864 = dma.done.wait (%p1200_p7), %s160_s26, 4096  }
  0x2f   : > { %866 = vsyncadd (%p1200_p7), %s160_s26, 4294963200  ;;  %v238_v0 = vld [vmem:[%s1193_s1 + $0x78] sm:$0xff]  ;;  %v237_v1 = vld [vmem:[%s1193_s1 + $0x70] sm:$0xff]  ;;  %p186_p8 = scmp.lt.s32.totalorder %s925_s16, 1  ;;  %vm503_vm0 = vcmask 261120  }
  0x30   : > { %666 = vmatprep.subr.mxu0 %v238_v0  ;;  %746 = vmatprep.subr.mxu1 %v238_v0  ;;  %v236_v2 = vld [vmem:[%s1193_s1 + $0x68] sm:$0xff]  ;;  %v235_v3 = vld [vmem:[%s1193_s1 + $0x60] sm:$0xff]  ;;  %v234_v4 = vld [vmem:[%s1193_s1 + $0x58] sm:$0xff] }
  0x31   : > { %667 = vmatpush3.msra.mxu0 %v238_v0  ;;  %762 = vmatpush3.msra.mxu1 %v238_v0  ;;  %v233_v5 = vld [vmem:[%s1193_s1 + $0x50] sm:$0xff]  ;;  %v232_v6 = vld [vmem:[%s1193_s1 + $0x48] sm:$0xff]  ;;  %v231_v7 = vld [vmem:[%s1193_s1 + $0x40] sm:$0xff]  ;;  %s1206_s16 = smov (!%p186_p8, %s925_s16), 1 }
  0x32   : > { %668 = vmatprep.subr.mxu0 %v237_v1  ;;  %747 = vmatprep.subr.mxu1 %v237_v1  ;;  %v230_v8 = vld [vmem:[%s1193_s1 + $0x38] sm:$0xff]  ;;  %v229_v9 = vld [vmem:[%s1193_s1 + $0x30] sm:$0xff]  ;;  %v228_v10 = vld [vmem:[%s1193_s1 + $0x28] sm:$0xff]  ;;  %s617_s12 = sshll.u32 %s1206_s16, 8 }
  0x33   : > { %669 = vmatpush3.msra.mxu0 %v237_v1  ;;  %763 = vmatpush3.msra.mxu1 %v237_v1  ;;  %v227_v11 = vld [vmem:[%s1193_s1 + $0x20] sm:$0xff]  ;;  %v226_v12 = vld [vmem:[%s1193_s1 + $0x18] sm:$0xff]  ;;  %v225_v13 = vld [vmem:[%s1193_s1 + $0x10] sm:$0xff] }
  0x34   : > { %670 = vmatprep.subr.mxu0 %v236_v2  ;;  %748 = vmatprep.subr.mxu1 %v236_v2  ;;  %v224_v14 = vld [vmem:[%s1193_s1 + $0x8] sm:$0xff]  ;;  %v223_v15 = vld [vmem:[%s1193_s1] sm:$0xff]  ;;  %v193_v20 = vld [vmem:[%s985_s28 + $0x10] sm:$0xff] }
  0x35   : > { %671 = vmatpush3.msra.mxu0 %v236_v2  ;;  %764 = vmatpush3.msra.mxu1 %v236_v2  ;;  %v191_v16 = vld [vmem:[%s985_s28] sm:$0xff]  ;;  %v192_v18 = vld [vmem:[%s985_s28 + $0x8] sm:$0xff]  ;;  %v209_v21 = vld [vmem:[%s985_s28 + $0x90] sm:$0xff] }
  0x36   : > { %672 = vmatprep.subr.mxu0 %v235_v3  ;;  %749 = vmatprep.subr.mxu1 %v235_v3  ;;  %v207_v17 = vld [vmem:[%s985_s28 + $0x80] sm:$0xff]  ;;  %v208_v19 = vld [vmem:[%s985_s28 + $0x88] sm:$0xff]  ;;  %v194_v22 = vld [vmem:[%s985_s28 + $0x18] sm:$0xff] }
  0x37   : > { %673 = vmatpush3.msra.mxu0 %v235_v3  ;;  %765 = vmatpush3.msra.mxu1 %v235_v3  ;;  %v210_v23 = vld [vmem:[%s985_s28 + $0x98] sm:$0xff]  ;;  %v195_v24 = vld [vmem:[%s985_s28 + $0x20] sm:$0xff]  ;;  %v196_v26 = vld [vmem:[%s985_s28 + $0x28] sm:$0xff] }
  0x38   : > { %674 = vmatprep.subr.mxu0 %v234_v4  ;;  %750 = vmatprep.subr.mxu1 %v234_v4  ;;  %v211_v25 = vld [vmem:[%s985_s28 + $0xa0] sm:$0xff]  ;;  %v212_v27 = vld [vmem:[%s985_s28 + $0xa8] sm:$0xff]  ;;  %v197_v28 = vld [vmem:[%s985_s28 + $0x30] sm:$0xff] }
  0x39   : > { %675 = vmatpush3.msra.mxu0 %v234_v4  ;;  %766 = vmatpush3.msra.mxu1 %v234_v4  ;;  %v213_v29 = vld [vmem:[%s985_s28 + $0xb0] sm:$0xff]  ;;  %v198_v30 = vld [vmem:[%s985_s28 + $0x38] sm:$0xff]  ;;  %v199_v32 = vld [vmem:[%s985_s28 + $0x40] sm:$0xff] }
  0x3a   : > { %676 = vmatprep.subr.mxu0 %v233_v5  ;;  %751 = vmatprep.subr.mxu1 %v233_v5  ;;  %v214_v31 = vld [vmem:[%s985_s28 + $0xb8] sm:$0xff]  ;;  %v215_v33 = vld [vmem:[%s985_s28 + $0xc0] sm:$0xff]  ;;  %v200_v34 = vld [vmem:[%s985_s28 + $0x48] sm:$0xff] }
  0x3b   : > { %677 = vmatpush3.msra.mxu0 %v233_v5  ;;  %767 = vmatpush3.msra.mxu1 %v233_v5  ;;  %v216_v35 = vld [vmem:[%s985_s28 + $0xc8] sm:$0xff]  ;;  %v201_v36 = vld [vmem:[%s985_s28 + $0x50] sm:$0xff]  ;;  %v202_v38 = vld [vmem:[%s985_s28 + $0x58] sm:$0xff] }
  0x3c   : > { %678 = vmatprep.subr.mxu0 %v232_v6  ;;  %752 = vmatprep.subr.mxu1 %v232_v6  ;;  %v217_v37 = vld [vmem:[%s985_s28 + $0xd0] sm:$0xff]  ;;  %v218_v39 = vld [vmem:[%s985_s28 + $0xd8] sm:$0xff]  ;;  %v203_v40 = vld [vmem:[%s985_s28 + $0x60] sm:$0xff] }
  0x3d   : > { %679 = vmatpush3.msra.mxu0 %v232_v6  ;;  %768 = vmatpush3.msra.mxu1 %v232_v6  ;;  %v219_v41 = vld [vmem:[%s985_s28 + $0xe0] sm:$0xff]  ;;  %v204_v42 = vld [vmem:[%s985_s28 + $0x68] sm:$0xff]  ;;  %v205_v44 = vld [vmem:[%s985_s28 + $0x70] sm:$0xff] }
  0x3e   : > { %680 = vmatprep.subr.mxu0 %v231_v7  ;;  %753 = vmatprep.subr.mxu1 %v231_v7  ;;  %v220_v43 = vld [vmem:[%s985_s28 + $0xe8] sm:$0xff]  ;;  %v221_v45 = vld [vmem:[%s985_s28 + $0xf0] sm:$0xff]  ;;  %v206_v46 = vld [vmem:[%s985_s28 + $0x78] sm:$0xff] }
  0x3f   : > { %681 = vmatpush3.msra.mxu0 %v231_v7  ;;  %769 = vmatpush3.msra.mxu1 %v231_v7  ;;  %v222_v47 = vld [vmem:[%s985_s28 + $0xf8] sm:$0xff]  ;;  %v1076_v48 = vld [vmem:[%s1194_s2] ss:$0 sm:$0xff]  ;;  %s1083_s28 = scalar_lea.vmem %s1195_s3, %s617_s12 }
  0x40   : > { %682 = vmatprep.subr.mxu0 %v230_v8  ;;  %754 = vmatprep.subr.mxu1 %v230_v8 }
  0x41   : > { %683 = vmatpush3.msra.mxu0 %v230_v8  ;;  %770 = vmatpush3.msra.mxu1 %v230_v8 }
  0x42   : > { %684 = vmatprep.subr.mxu0 %v229_v9  ;;  %755 = vmatprep.subr.mxu1 %v229_v9 }
  0x43   : > { %685 = vmatpush3.msra.mxu0 %v229_v9  ;;  %771 = vmatpush3.msra.mxu1 %v229_v9 }
  0x44   : > { %686 = vmatprep.subr.mxu0 %v228_v10  ;;  %756 = vmatprep.subr.mxu1 %v228_v10 }
  0x45   : > { %687 = vmatpush3.msra.mxu0 %v228_v10  ;;  %772 = vmatpush3.msra.mxu1 %v228_v10 }
  0x46   : > { %688 = vmatprep.subr.mxu0 %v227_v11  ;;  %757 = vmatprep.subr.mxu1 %v227_v11 }
  0x47   : > { %689 = vmatpush3.msra.mxu0 %v227_v11  ;;  %773 = vmatpush3.msra.mxu1 %v227_v11 }
  0x48   : > { %690 = vmatprep.subr.mxu0 %v226_v12  ;;  %758 = vmatprep.subr.mxu1 %v226_v12 }
  0x49   : > { %691 = vmatpush3.msra.mxu0 %v226_v12  ;;  %774 = vmatpush3.msra.mxu1 %v226_v12 }
  0x4a   : > { %692 = vmatprep.subr.mxu0 %v225_v13  ;;  %759 = vmatprep.subr.mxu1 %v225_v13 }
  0x4b   : > { %693 = vmatpush3.msra.mxu0 %v225_v13  ;;  %775 = vmatpush3.msra.mxu1 %v225_v13 }
  0x4c   : > { %694 = vmatprep.subr.mxu0 %v224_v14  ;;  %760 = vmatprep.subr.mxu1 %v224_v14 }
  0x4d   : > { %695 = vmatpush3.msra.mxu0 %v224_v14  ;;  %776 = vmatpush3.msra.mxu1 %v224_v14 }
  0x4e   : > { %696 = vmatprep.subr.mxu0 %v223_v15  ;;  %761 = vmatprep.subr.mxu1 %v223_v15 }
  0x4f   : > { %697 = vmatpush3.msra.mxu0 %v223_v15  ;;  %777 = vmatpush3.msra.mxu1 %v223_v15 }
  0x50   : > { %698 = vmatprep.mubr.f32.mxu0 %v191_v16  ;;  %722 = vmatprep.mubr.f32.mxu1 %v207_v17 }
  0x51   : > { %699 = vmatmul.mubr.f32.vlgmr.msra.gmra.mxu0 %v192_v18  ;;  %723 = vmatmul.mubr.f32.vlgmr.msra.gmra.mxu1 %v208_v19 }
  0x52   : > { %701 = vmatprep.mubr.f32.mxu0 %v193_v20  ;;  %725 = vmatprep.mubr.f32.mxu1 %v209_v21 }
  0x55   : > { %702 = vmatmul.mubr.f32.gmra.mxu0 %v194_v22  ;;  %726 = vmatmul.mubr.f32.gmra.mxu1 %v210_v23 }
  0x56   : > { %704 = vmatprep.mubr.f32.mxu0 %v195_v24  ;;  %728 = vmatprep.mubr.f32.mxu1 %v211_v25 }
  0x59   : > { %705 = vmatmul.mubr.f32.gmra.mxu0 %v196_v26  ;;  %729 = vmatmul.mubr.f32.gmra.mxu1 %v212_v27 }
  0x5a   : > { %707 = vmatprep.mubr.f32.mxu0 %v197_v28  ;;  %731 = vmatprep.mubr.f32.mxu1 %v213_v29 }
  0x5d   : > { %708 = vmatmul.mubr.f32.gmra.mxu0 %v198_v30  ;;  %732 = vmatmul.mubr.f32.gmra.mxu1 %v214_v31 }
  0x5e   : > { %710 = vmatprep.mubr.f32.mxu0 %v199_v32  ;;  %734 = vmatprep.mubr.f32.mxu1 %v215_v33 }
  0x61   : > { %711 = vmatmul.mubr.f32.gmra.mxu0 %v200_v34  ;;  %735 = vmatmul.mubr.f32.gmra.mxu1 %v216_v35 }
  0x62   : > { %713 = vmatprep.mubr.f32.mxu0 %v201_v36  ;;  %737 = vmatprep.mubr.f32.mxu1 %v217_v37 }
  0x65   : > { %714 = vmatmul.mubr.f32.gmra.mxu0 %v202_v38  ;;  %738 = vmatmul.mubr.f32.gmra.mxu1 %v218_v39 }
  0x66   : > { %716 = vmatprep.mubr.f32.mxu0 %v203_v40  ;;  %740 = vmatprep.mubr.f32.mxu1 %v219_v41 }
  0x69   : > { %717 = vmatmul.mubr.f32.gmra.mxu0 %v204_v42  ;;  %741 = vmatmul.mubr.f32.gmra.mxu1 %v220_v43 }
  0x6a   : > { %719 = vmatprep.mubr.f32.mxu0 %v205_v44  ;;  %743 = vmatprep.mubr.f32.mxu1 %v221_v45 }
  0x6d   : > { %720 = vmatmul.mubr.f32.gmra.mxu0 %v206_v46  ;;  %744 = vmatmul.mubr.f32.gmra.mxu1 %v222_v47 }
 0x111   : > { %v700_v49 = vpop.f32.mrf.mxu0  ;;  %v724_v50 = vpop.f32.mrf.mxu1 }
 0x112   : > { %v318_v51 = vadd.f32 %v700_v49, %v1076_v48  ;;  %v398_v52 = vadd.f32 %v724_v50, %v1076_v48 }
 0x113   : > { %v312_v53 = vpop.f32.mrf.mxu0  ;;  %v392_v54 = vpop.f32.mrf.mxu1 }
 0x114   : > { %v472_v55 = vmax.f32 %v318_v51, 0.0  ;;  %v488_v56 = vmax.f32 %v398_v52, 0.0  ;;  %v313_v57 = vadd.f32 %v1076_v48, %v312_v53  ;;  %v393_v58 = vadd.f32 %v1076_v48, %v392_v54 }
 0x115   : > { %v703_v59 = vpop.f32.mrf.mxu0  ;;  %v727_v60 = vpop.f32.mrf.mxu1 }
 0x116   : > { %505 = vst.msk [vmem:[%s1083_s28 + $0x8] sm:$0xff] %vm503_vm0, %v472_v55  ;;  %521 = vst.msk [vmem:[%s1083_s28 + $0x88] sm:$0xff] %vm503_vm0, %v488_v56  ;;  %v471_v61 = vmax.f32 %v313_v57, 0.0  ;;  %v487_v62 = vmax.f32 %v393_v58, 0.0  ;;  %v328_v63 = vadd.f32 %v703_v59, %v1076_v48  ;;  %v408_v0 = vadd.f32 %v727_v60, %v1076_v48 }
 0x117   : > { %v322_v1 = vpop.f32.mrf.mxu0  ;;  %v402_v2 = vpop.f32.mrf.mxu1 }
 0x118   : > { %504 = vst.msk [vmem:[%s1083_s28] sm:$0xff] %vm503_vm0, %v471_v61  ;;  %520 = vst.msk [vmem:[%s1083_s28 + $0x80] sm:$0xff] %vm503_vm0, %v487_v62  ;;  %v474_v3 = vmax.f32 %v328_v63, 0.0  ;;  %v490_v4 = vmax.f32 %v408_v0, 0.0  ;;  %v323_v5 = vadd.f32 %v1076_v48, %v322_v1  ;;  %v403_v6 = vadd.f32 %v1076_v48, %v402_v2 }
 0x119   : > { %v706_v7 = vpop.f32.mrf.mxu0  ;;  %v730_v8 = vpop.f32.mrf.mxu1 }
 0x11a   : > { %507 = vst.msk [vmem:[%s1083_s28 + $0x18] sm:$0xff] %vm503_vm0, %v474_v3  ;;  %523 = vst.msk [vmem:[%s1083_s28 + $0x98] sm:$0xff] %vm503_vm0, %v490_v4  ;;  %v473_v9 = vmax.f32 %v323_v5, 0.0  ;;  %v489_v10 = vmax.f32 %v403_v6, 0.0  ;;  %v338_v11 = vadd.f32 %v706_v7, %v1076_v48  ;;  %v418_v12 = vadd.f32 %v730_v8, %v1076_v48 }
 0x11b   : > { %v332_v13 = vpop.f32.mrf.mxu0  ;;  %v412_v14 = vpop.f32.mrf.mxu1 }
 0x11c   : > { %506 = vst.msk [vmem:[%s1083_s28 + $0x10] sm:$0xff] %vm503_vm0, %v473_v9  ;;  %522 = vst.msk [vmem:[%s1083_s28 + $0x90] sm:$0xff] %vm503_vm0, %v489_v10  ;;  %v476_v15 = vmax.f32 %v338_v11, 0.0  ;;  %v492_v16 = vmax.f32 %v418_v12, 0.0  ;;  %v333_v17 = vadd.f32 %v1076_v48, %v332_v13  ;;  %v413_v18 = vadd.f32 %v1076_v48, %v412_v14 }
 0x11d   : > { %v709_v19 = vpop.f32.mrf.mxu0  ;;  %v733_v20 = vpop.f32.mrf.mxu1 }
 0x11e   : > { %509 = vst.msk [vmem:[%s1083_s28 + $0x28] sm:$0xff] %vm503_vm0, %v476_v15  ;;  %525 = vst.msk [vmem:[%s1083_s28 + $0xa8] sm:$0xff] %vm503_vm0, %v492_v16  ;;  %v475_v21 = vmax.f32 %v333_v17, 0.0  ;;  %v491_v22 = vmax.f32 %v413_v18, 0.0  ;;  %v348_v23 = vadd.f32 %v709_v19, %v1076_v48  ;;  %v428_v24 = vadd.f32 %v733_v20, %v1076_v48 }
 0x11f   : > { %v342_v25 = vpop.f32.mrf.mxu0  ;;  %v422_v26 = vpop.f32.mrf.mxu1 }
 0x120   : > { %508 = vst.msk [vmem:[%s1083_s28 + $0x20] sm:$0xff] %vm503_vm0, %v475_v21  ;;  %524 = vst.msk [vmem:[%s1083_s28 + $0xa0] sm:$0xff] %vm503_vm0, %v491_v22  ;;  %v478_v27 = vmax.f32 %v348_v23, 0.0  ;;  %v494_v28 = vmax.f32 %v428_v24, 0.0  ;;  %v343_v29 = vadd.f32 %v1076_v48, %v342_v25  ;;  %v423_v30 = vadd.f32 %v1076_v48, %v422_v26 }
 0x121   : > { %v712_v31 = vpop.f32.mrf.mxu0  ;;  %v736_v32 = vpop.f32.mrf.mxu1 }
 0x122   : > { %511 = vst.msk [vmem:[%s1083_s28 + $0x38] sm:$0xff] %vm503_vm0, %v478_v27  ;;  %527 = vst.msk [vmem:[%s1083_s28 + $0xb8] sm:$0xff] %vm503_vm0, %v494_v28  ;;  %v477_v33 = vmax.f32 %v343_v29, 0.0  ;;  %v493_v34 = vmax.f32 %v423_v30, 0.0  ;;  %v358_v35 = vadd.f32 %v712_v31, %v1076_v48  ;;  %v438_v36 = vadd.f32 %v736_v32, %v1076_v48 }
 0x123   : > { %v352_v37 = vpop.f32.mrf.mxu0  ;;  %v432_v38 = vpop.f32.mrf.mxu1 }
 0x124   : > { %510 = vst.msk [vmem:[%s1083_s28 + $0x30] sm:$0xff] %vm503_vm0, %v477_v33  ;;  %526 = vst.msk [vmem:[%s1083_s28 + $0xb0] sm:$0xff] %vm503_vm0, %v493_v34  ;;  %v480_v39 = vmax.f32 %v358_v35, 0.0  ;;  %v496_v40 = vmax.f32 %v438_v36, 0.0  ;;  %v353_v41 = vadd.f32 %v1076_v48, %v352_v37  ;;  %v433_v42 = vadd.f32 %v1076_v48, %v432_v38 }
 0x125   : > { %v715_v43 = vpop.f32.mrf.mxu0  ;;  %v739_v44 = vpop.f32.mrf.mxu1 }
 0x126   : > { %513 = vst.msk [vmem:[%s1083_s28 + $0x48] sm:$0xff] %vm503_vm0, %v480_v39  ;;  %529 = vst.msk [vmem:[%s1083_s28 + $0xc8] sm:$0xff] %vm503_vm0, %v496_v40  ;;  %v479_v45 = vmax.f32 %v353_v41, 0.0  ;;  %v495_v46 = vmax.f32 %v433_v42, 0.0  ;;  %v368_v47 = vadd.f32 %v715_v43, %v1076_v48  ;;  %v448_v49 = vadd.f32 %v739_v44, %v1076_v48 }
 0x127   : > { %v362_v50 = vpop.f32.mrf.mxu0  ;;  %v442_v51 = vpop.f32.mrf.mxu1 }
 0x128   : > { %512 = vst.msk [vmem:[%s1083_s28 + $0x40] sm:$0xff] %vm503_vm0, %v479_v45  ;;  %528 = vst.msk [vmem:[%s1083_s28 + $0xc0] sm:$0xff] %vm503_vm0, %v495_v46  ;;  %v482_v52 = vmax.f32 %v368_v47, 0.0  ;;  %v498_v53 = vmax.f32 %v448_v49, 0.0  ;;  %v363_v54 = vadd.f32 %v1076_v48, %v362_v50  ;;  %v443_v55 = vadd.f32 %v1076_v48, %v442_v51 }
 0x129   : > { %v718_v56 = vpop.f32.mrf.mxu0  ;;  %v742_v57 = vpop.f32.mrf.mxu1 }
 0x12a   : > { %515 = vst.msk [vmem:[%s1083_s28 + $0x58] sm:$0xff] %vm503_vm0, %v482_v52  ;;  %531 = vst.msk [vmem:[%s1083_s28 + $0xd8] sm:$0xff] %vm503_vm0, %v498_v53  ;;  %v481_v58 = vmax.f32 %v363_v54, 0.0  ;;  %v497_v59 = vmax.f32 %v443_v55, 0.0  ;;  %v378_v60 = vadd.f32 %v718_v56, %v1076_v48  ;;  %v458_v61 = vadd.f32 %v742_v57, %v1076_v48 }
 0x12b   : > { %v372_v62 = vpop.f32.mrf.mxu0  ;;  %v452_v63 = vpop.f32.mrf.mxu1 }
 0x12c   : > { %514 = vst.msk [vmem:[%s1083_s28 + $0x50] sm:$0xff] %vm503_vm0, %v481_v58  ;;  %530 = vst.msk [vmem:[%s1083_s28 + $0xd0] sm:$0xff] %vm503_vm0, %v497_v59  ;;  %v484_v0 = vmax.f32 %v378_v60, 0.0  ;;  %v500_v1 = vmax.f32 %v458_v61, 0.0  ;;  %v373_v2 = vadd.f32 %v1076_v48, %v372_v62  ;;  %v453_v3 = vadd.f32 %v1076_v48, %v452_v63 }
 0x12d   : > { %v721_v4 = vpop.f32.mrf.mxu0  ;;  %v745_v5 = vpop.f32.mrf.mxu1 }
 0x12e   : > { %517 = vst.msk [vmem:[%s1083_s28 + $0x68] sm:$0xff] %vm503_vm0, %v484_v0  ;;  %533 = vst.msk [vmem:[%s1083_s28 + $0xe8] sm:$0xff] %vm503_vm0, %v500_v1  ;;  %v483_v6 = vmax.f32 %v373_v2, 0.0  ;;  %v499_v7 = vmax.f32 %v453_v3, 0.0  ;;  %v388_v8 = vadd.f32 %v721_v4, %v1076_v48  ;;  %v468_v9 = vadd.f32 %v745_v5, %v1076_v48 }
 0x12f   : > { %v382_v10 = vpop.f32.mrf.mxu0  ;;  %v462_v11 = vpop.f32.mrf.mxu1 }
 0x130   : > { %516 = vst.msk [vmem:[%s1083_s28 + $0x60] sm:$0xff] %vm503_vm0, %v483_v6  ;;  %532 = vst.msk [vmem:[%s1083_s28 + $0xe0] sm:$0xff] %vm503_vm0, %v499_v7  ;;  %v486_v12 = vmax.f32 %v388_v8, 0.0  ;;  %v502_v13 = vmax.f32 %v468_v9, 0.0  ;;  %v383_v14 = vadd.f32 %v1076_v48, %v382_v10  ;;  %v463_v15 = vadd.f32 %v1076_v48, %v462_v11 }
 0x132   : > { %519 = vst.msk [vmem:[%s1083_s28 + $0x78] sm:$0xff] %vm503_vm0, %v486_v12  ;;  %535 = vst.msk [vmem:[%s1083_s28 + $0xf8] sm:$0xff] %vm503_vm0, %v502_v13  ;;  %v485_v16 = vmax.f32 %v383_v14, 0.0  ;;  %v501_v17 = vmax.f32 %v463_v15, 0.0 }
 0x134   : > { %518 = vst.msk [vmem:[%s1083_s28 + $0x70] sm:$0xff] %vm503_vm0, %v485_v16  ;;  %534 = vst.msk [vmem:[%s1083_s28 + $0xf0] sm:$0xff] %vm503_vm0, %v501_v17 }
 0x135 PF: > { %p13_p9 = scmp.ge.s32.totalorder %s928_s17, 4   ;;  %s1201_s12 = smov %s873_s13 }
 0x136   : > { %s1202_s13 = smov %s877_s14  ;;  %s1203_s14 = smov %s938_s20 }
 0x137   : > { %s1204_s15 = smov %s928_s17  ;;  %15 = sbr.rel (!%p13_p9) target bundleno = 3 (0x3), region = 72 }
 0x13c   :  { %557 = vsyncpa [#allocation3], 1 }
 0x13d   :  { %559 = vsyncpa [#allocation3 + $0x1], 1 }

</bundles_post_ra>
